<compile_context>
chip_gen: v5e
topology: v5e:2x2
jax: 0.10.0
libtpu: 0.0.40
codegen_flags: <defaults>
</compile_context>

<pallas_src>
import math

import jax
import jax.numpy as jnp
from jax.experimental import pallas as pl
from jax.experimental.pallas import tpu as pltpu


_INV_SQRT2 = 0.7071067811865476  # 1/sqrt(2)


def _classifier_kernel(x_ref, w1_ref, b1_ref, gamma_ref, beta_ref,
                       w2_ref, b2_ref, o_ref):
    """One batch tile: Linear -> exact-erf GeLU -> LayerNorm(1e-12) -> Linear."""
    # ---- Linear 1 (MXU, f32 accumulation) ----
    h = jnp.dot(x_ref[...], w1_ref[...], preferred_element_type=jnp.float32)
    h = h + b1_ref[...].astype(jnp.float32)

    # ---- GeLU, exact erf form (matches BERT ACT2FN['gelu']) ----
    h = h * (0.5 + 0.5 * jax.lax.erf(h * _INV_SQRT2))

    # ---- LayerNorm over hidden dim, single-pass stats: var = E[h^2] - mean^2 ----
    mean = jnp.mean(h, axis=-1, keepdims=True)
    mean_sq = jnp.mean(h * h, axis=-1, keepdims=True)
    var = mean_sq - mean * mean
    h = (h - mean) * jax.lax.rsqrt(var + 1e-12)
    h = h * gamma_ref[...].astype(jnp.float32) + beta_ref[...].astype(jnp.float32)

    # ---- Linear 2 (MXU).  Cast activations to the weight dtype so bf16
    #      weights hit the native MXU path; accumulate in f32. ----
    out = jnp.dot(h.astype(w2_ref.dtype), w2_ref[...],
                  preferred_element_type=jnp.float32)
    out = out + b2_ref[...].astype(jnp.float32)
    o_ref[...] = out.astype(o_ref.dtype)


def _round_up(n, m):
    return ((n + m - 1) // m) * m


def _choose_tile_b(batch, in_dim, hid_dim, out_pad,
                   x_bytes, w_bytes, out_bytes,
                   budget_bytes=48 * 1024 * 1024):
    """Largest batch tile (multiple of 8) whose VMEM footprint fits the budget."""
    b_cap = _round_up(batch, 8)
    resident = (in_dim * hid_dim + 3 * hid_dim + hid_dim * out_pad + out_pad) * w_bytes
    chosen = min(8, b_cap) if b_cap >= 8 else 8
    for tb in (1024, 512, 256, 128, 64, 32, 16, 8):
        if tb > b_cap:
            continue
        need = (resident
                + 2 * tb * in_dim * x_bytes      # double-buffered input tile
                + 2 * tb * out_pad * out_bytes   # double-buffered output tile
                + tb * hid_dim * 4)              # f32 intermediate
        if need <= budget_bytes:
            chosen = tb
            break
    need = (resident
            + 2 * chosen * in_dim * x_bytes
            + 2 * chosen * out_pad * out_bytes
            + chosen * hid_dim * 4)
    return chosen, need


def simple_classifier(x, w1, b1, gamma, beta, w2, b2):
    """SimpleClassifier forward.  x: [B, in_dim] -> [B, out_dim].

    Weights are stored [in_features, out_features] (x @ W == PyTorch x @ W.T).
    """
    B, in_dim = x.shape
    hid_dim = w1.shape[1]
    out_dim = w2.shape[1]

    # Lane-dense output: pad out_dim up to a multiple of 128 (unmasked vst);
    # padded columns are zero and sliced off below.
    out_pad = _round_up(out_dim, 128)

    b1 = b1.reshape(1, hid_dim)
    gamma = gamma.reshape(1, hid_dim)
    beta = beta.reshape(1, hid_dim)
    b2 = b2.reshape(1, out_dim)
    if out_pad != out_dim:
        w2 = jnp.pad(w2, ((0, 0), (0, out_pad - out_dim)))
        b2 = jnp.pad(b2, ((0, 0), (0, out_pad - out_dim)))

    tile_b, vmem_need = _choose_tile_b(
        B, in_dim, hid_dim, out_pad,
        x.dtype.itemsize, w1.dtype.itemsize, x.dtype.itemsize)

    # Pad the batch so the grid divides evenly (every block full size, no
    # partial-block masking).
    b_pad = _round_up(max(B, tile_b), tile_b)
    if b_pad != B:
        x = jnp.pad(x, ((0, b_pad - B), (0, 0)))

    grid = (b_pad // tile_b,)
    resident = lambda i: (0, 0)  # params stay VMEM-resident across all grid steps

    cost = pl.CostEstimate(
        flops=2 * b_pad * (in_dim * hid_dim + hid_dim * out_pad),
        transcendentals=b_pad * hid_dim,
        bytes_accessed=(x.size * x.dtype.itemsize
                        + w1.size * w1.dtype.itemsize
                        + w2.size * w2.dtype.itemsize
                        + (3 * hid_dim + out_pad) * w1.dtype.itemsize
                        + b_pad * out_pad * x.dtype.itemsize))

    out = pl.pallas_call(
        _classifier_kernel,
        out_shape=jax.ShapeDtypeStruct((b_pad, out_pad), x.dtype),
        grid_spec=pltpu.PrefetchScalarGridSpec(
            num_scalar_prefetch=0,
            grid=grid,
            in_specs=[
                pl.BlockSpec((tile_b, in_dim), lambda i: (i, 0)),   # x  (batch-tiled)
                pl.BlockSpec((in_dim, hid_dim), resident),          # w1
                pl.BlockSpec((1, hid_dim), resident),               # b1
                pl.BlockSpec((1, hid_dim), resident),               # gamma
                pl.BlockSpec((1, hid_dim), resident),               # beta
                pl.BlockSpec((hid_dim, out_pad), resident),         # w2 (lane-padded)
                pl.BlockSpec((1, out_pad), resident),               # b2 (lane-padded)
            ],
            out_specs=pl.BlockSpec((tile_b, out_pad), lambda i: (i, 0)),
        ),
        compiler_params=pltpu.CompilerParams(
            # batch tiles are independent -> megacore/v7x can shard them
            dimension_semantics=("parallel",),
            vmem_limit_bytes=int(min(max(vmem_need * 3 // 2, 16 << 20), 64 << 20)),
        ),
        cost_estimate=cost,
    )(x, w1, b1, gamma, beta, w2, b2)

    return out[:B, :out_dim]


def reference(x, w1, b1, gamma, beta, w2, b2):
    """Pure-JAX reference matching the PyTorch module (two-pass LayerNorm)."""
    h = x @ w1 + b1.reshape(1, -1)
    h = 0.5 * h * (1.0 + jax.lax.erf(h / jnp.sqrt(2.0)))
    mean = jnp.mean(h, axis=-1, keepdims=True)
    var = jnp.mean(jnp.square(h - mean), axis=-1, keepdims=True)
    h = (h - mean) / jnp.sqrt(var + 1e-12)
    h = h * gamma.reshape(1, -1) + beta.reshape(1, -1)
    return h @ w2 + b2.reshape(1, -1)


if __name__ == "__main__":
    # Small shapes consistent with SimpleClassifier(in_dim, hid_dim, out_dim, dropout)
    B, in_dim, hid_dim, out_dim = 8, 32, 64, 16

    key = jax.random.PRNGKey(0)
    kx, k1, k2, k3, k4 = jax.random.split(key, 5)

    x = jax.random.normal(kx, (B, in_dim), dtype=jnp.float32)

    # Deterministic synthetic parameters (nn.Linear-like scales).
    w1 = jax.random.normal(k1, (in_dim, hid_dim), dtype=jnp.float32) * 0.02
    b1 = jax.random.normal(k2, (1, hid_dim), dtype=jnp.float32) * 0.02
    gamma = jnp.ones((1, hid_dim), dtype=jnp.float32)   # BertLayerNorm weight
    beta = jnp.zeros((1, hid_dim), dtype=jnp.float32)   # BertLayerNorm bias
    w2 = jax.random.normal(k3, (hid_dim, out_dim), dtype=jnp.float32) * 0.02
    b2 = jax.random.normal(k4, (1, out_dim), dtype=jnp.float32) * 0.02

    out = simple_classifier(x, w1, b1, gamma, beta, w2, b2)
    out = jax.block_until_ready(out)

    ref = reference(x, w1, b1, gamma, beta, w2, b2)
    assert out.shape == (B, out_dim), out.shape
    assert jnp.allclose(out, ref, atol=1e-4, rtol=1e-4), "mismatch vs reference"

    print("KERNEL_OK")
</pallas_src>

<mosaic_0001>
module attributes {stable_mosaic.version = 11 : i64} {
  func.func @_classifier_kernel(%arg0: i32, %arg1: memref<8x32xf32, #tpu.memory_space<vmem>>, %arg2: memref<32x64xf32, #tpu.memory_space<vmem>>, %arg3: memref<1x64xf32, #tpu.memory_space<vmem>>, %arg4: memref<1x64xf32, #tpu.memory_space<vmem>>, %arg5: memref<1x64xf32, #tpu.memory_space<vmem>>, %arg6: memref<64x128xf32, #tpu.memory_space<vmem>>, %arg7: memref<1x128xf32, #tpu.memory_space<vmem>>, %arg8: memref<8x128xf32, #tpu.memory_space<vmem>>) attributes {dimension_semantics = [#tpu.dimension_semantics<parallel>], iteration_bounds = array<i64: 1>, scalar_prefetch = 0 : i64, scratch_operands = 0 : i64, tpu.core_type = #tpu.core_type<tc>, window_params = [{transform_indices = @transform_0, window_bounds = array<i64: 8, 32>}, {pipeline_mode = #tpu.pipeline_mode<synchronous>, transform_indices = @transform_1, window_bounds = array<i64: 32, 64>}, {pipeline_mode = #tpu.pipeline_mode<synchronous>, transform_indices = @transform_2, window_bounds = array<i64: 1, 64>}, {pipeline_mode = #tpu.pipeline_mode<synchronous>, transform_indices = @transform_3, window_bounds = array<i64: 1, 64>}, {pipeline_mode = #tpu.pipeline_mode<synchronous>, transform_indices = @transform_4, window_bounds = array<i64: 1, 64>}, {pipeline_mode = #tpu.pipeline_mode<synchronous>, transform_indices = @transform_5, window_bounds = array<i64: 64, 128>}, {pipeline_mode = #tpu.pipeline_mode<synchronous>, transform_indices = @transform_6, window_bounds = array<i64: 1, 128>}, {transform_indices = @transform_7, window_bounds = array<i64: 8, 128>}]} {
    %c0 = arith.constant 0 : index
    %c0_0 = arith.constant 0 : index
    %0 = vector.load %arg1[%c0, %c0_0] : memref<8x32xf32, #tpu.memory_space<vmem>>, vector<8x32xf32>
    %c0_1 = arith.constant 0 : index
    %c0_2 = arith.constant 0 : index
    %1 = vector.load %arg2[%c0_1, %c0_2] : memref<32x64xf32, #tpu.memory_space<vmem>>, vector<32x64xf32>
    %cst = arith.constant dense<0.000000e+00> : vector<8x64xf32>
    %2 = tpu.matmul %0, %1, %cst {dimension_numbers = #tpu.dot_dimension_numbers<[1], [0], [0], [1], [0, 0, 1, 1], [], []>} : vector<8x32xf32>, vector<32x64xf32>, vector<8x64xf32> -> vector<8x64xf32>
    %c0_3 = arith.constant 0 : index
    %c0_4 = arith.constant 0 : index
    %3 = vector.load %arg3[%c0_3, %c0_4] : memref<1x64xf32, #tpu.memory_space<vmem>>, vector<1x64xf32>
    %4 = vector.broadcast %3 : vector<1x64xf32> to vector<8x64xf32>
    %5 = arith.addf %2, %4 : vector<8x64xf32>
    %cst_5 = arith.constant 0.707106769 : f32
    %6 = vector.broadcast %cst_5 : f32 to vector<8x64xf32>
    %7 = arith.mulf %5, %6 : vector<8x64xf32>
    %8 = math.erf %7 : vector<8x64xf32>
    %cst_6 = arith.constant 5.000000e-01 : f32
    %9 = vector.broadcast %cst_6 : f32 to vector<8x64xf32>
    %10 = arith.mulf %9, %8 : vector<8x64xf32>
    %cst_7 = arith.constant 5.000000e-01 : f32
    %11 = vector.broadcast %cst_7 : f32 to vector<8x64xf32>
    %12 = arith.addf %11, %10 : vector<8x64xf32>
    %13 = arith.mulf %5, %12 : vector<8x64xf32>
    %cst_8 = arith.constant dense<0.000000e+00> : vector<8xf32>
    %14 = vector.multi_reduction <add>, %13, %cst_8 [1] : vector<8x64xf32> to vector<8xf32>
    %15 = vector.shape_cast %14 : vector<8xf32> to vector<8x1xf32>
    %cst_9 = arith.constant 6.400000e+01 : f32
    %16 = vector.broadcast %cst_9 : f32 to vector<8x1xf32>
    %17 = arith.divf %15, %16 : vector<8x1xf32>
    %18 = arith.mulf %13, %13 : vector<8x64xf32>
    %cst_10 = arith.constant dense<0.000000e+00> : vector<8xf32>
    %19 = vector.multi_reduction <add>, %18, %cst_10 [1] : vector<8x64xf32> to vector<8xf32>
    %20 = vector.shape_cast %19 : vector<8xf32> to vector<8x1xf32>
    %cst_11 = arith.constant 6.400000e+01 : f32
    %21 = vector.broadcast %cst_11 : f32 to vector<8x1xf32>
    %22 = arith.divf %20, %21 : vector<8x1xf32>
    %23 = arith.mulf %17, %17 : vector<8x1xf32>
    %24 = arith.subf %22, %23 : vector<8x1xf32>
    %25 = vector.broadcast %17 : vector<8x1xf32> to vector<8x64xf32>
    %26 = arith.subf %13, %25 : vector<8x64xf32>
    %cst_12 = arith.constant 9.99999996E-13 : f32
    %27 = vector.broadcast %cst_12 : f32 to vector<8x1xf32>
    %28 = arith.addf %24, %27 : vector<8x1xf32>
    %29 = math.rsqrt %28 : vector<8x1xf32>
    %30 = vector.broadcast %29 : vector<8x1xf32> to vector<8x64xf32>
    %31 = arith.mulf %26, %30 : vector<8x64xf32>
    %c0_13 = arith.constant 0 : index
    %c0_14 = arith.constant 0 : index
    %32 = vector.load %arg4[%c0_13, %c0_14] : memref<1x64xf32, #tpu.memory_space<vmem>>, vector<1x64xf32>
    %33 = vector.broadcast %32 : vector<1x64xf32> to vector<8x64xf32>
    %34 = arith.mulf %31, %33 : vector<8x64xf32>
    %c0_15 = arith.constant 0 : index
    %c0_16 = arith.constant 0 : index
    %35 = vector.load %arg5[%c0_15, %c0_16] : memref<1x64xf32, #tpu.memory_space<vmem>>, vector<1x64xf32>
    %36 = vector.broadcast %35 : vector<1x64xf32> to vector<8x64xf32>
    %37 = arith.addf %34, %36 : vector<8x64xf32>
    %c0_17 = arith.constant 0 : index
    %c0_18 = arith.constant 0 : index
    %38 = vector.load %arg6[%c0_17, %c0_18] : memref<64x128xf32, #tpu.memory_space<vmem>>, vector<64x128xf32>
    %cst_19 = arith.constant dense<0.000000e+00> : vector<8x128xf32>
    %39 = tpu.matmul %37, %38, %cst_19 {dimension_numbers = #tpu.dot_dimension_numbers<[1], [0], [0], [1], [0, 0, 1, 1], [], []>} : vector<8x64xf32>, vector<64x128xf32>, vector<8x128xf32> -> vector<8x128xf32>
    %c0_20 = arith.constant 0 : index
    %c0_21 = arith.constant 0 : index
    %40 = vector.load %arg7[%c0_20, %c0_21] : memref<1x128xf32, #tpu.memory_space<vmem>>, vector<1x128xf32>
    %41 = vector.broadcast %40 : vector<1x128xf32> to vector<8x128xf32>
    %42 = arith.addf %39, %41 : vector<8x128xf32>
    %c0_22 = arith.constant 0 : index
    %c0_23 = arith.constant 0 : index
    %43 = vector.load %arg8[%c0_22, %c0_23] : memref<8x128xf32, #tpu.memory_space<vmem>>, vector<8x128xf32>
    tpu.vector_store %arg8[%c0_22, %c0_23], %42 {strides = array<i32>} : memref<8x128xf32, #tpu.memory_space<vmem>>, vector<8x128xf32>,
    return
  }
  func.func @transform_0(%arg0: i32) -> (i32, i32) {
    %c0_i32 = arith.constant 0 : i32
    %c0_i32_0 = arith.constant 0 : i32
    return %arg0, %c0_i32 : i32, i32
  }
  func.func @transform_1(%arg0: i32) -> (i32, i32) {
    %c0_i32 = arith.constant 0 : i32
    %c0_i32_0 = arith.constant 0 : i32
    %c0_i32_1 = arith.constant 0 : i32
    return %c0_i32, %c0_i32_0 : i32, i32
  }
  func.func @transform_2(%arg0: i32) -> (i32, i32) {
    %c0_i32 = arith.constant 0 : i32
    %c0_i32_0 = arith.constant 0 : i32
    %c0_i32_1 = arith.constant 0 : i32
    return %c0_i32, %c0_i32_0 : i32, i32
  }
  func.func @transform_3(%arg0: i32) -> (i32, i32) {
    %c0_i32 = arith.constant 0 : i32
    %c0_i32_0 = arith.constant 0 : i32
    %c0_i32_1 = arith.constant 0 : i32
    return %c0_i32, %c0_i32_0 : i32, i32
  }
  func.func @transform_4(%arg0: i32) -> (i32, i32) {
    %c0_i32 = arith.constant 0 : i32
    %c0_i32_0 = arith.constant 0 : i32
    %c0_i32_1 = arith.constant 0 : i32
    return %c0_i32, %c0_i32_0 : i32, i32
  }
  func.func @transform_5(%arg0: i32) -> (i32, i32) {
    %c0_i32 = arith.constant 0 : i32
    %c0_i32_0 = arith.constant 0 : i32
    %c0_i32_1 = arith.constant 0 : i32
    return %c0_i32, %c0_i32_0 : i32, i32
  }
  func.func @transform_6(%arg0: i32) -> (i32, i32) {
    %c0_i32 = arith.constant 0 : i32
    %c0_i32_0 = arith.constant 0 : i32
    %c0_i32_1 = arith.constant 0 : i32
    return %c0_i32, %c0_i32_0 : i32, i32
  }
  func.func @transform_7(%arg0: i32) -> (i32, i32) {
    %c0_i32 = arith.constant 0 : i32
    %c0_i32_0 = arith.constant 0 : i32
    return %arg0, %c0_i32 : i32, i32
  }
}

</mosaic_0001>

<bundles_post_ra>
// kernel: tpu_custom_call.1
= control target key start
LH: loop header
LB: loop body
LE: loop exit
PB: predicated region body
PF: predicated region fallthrough
CT: control target
= control target key end

     0   :  { %12 = vsyncpa [#allocation3], 0  ;;  %s441_s0 = inlined_call_operand.hbm [shape: f32[8,32], index: 0, kind: input, shape index: {}]   ;;  %s442_s1 = inlined_call_operand.hbm [shape: f32[32,64], index: 1, kind: input, shape index: {}]   ;;  %s443_s2 = inlined_call_operand.vmem [shape: f32[1,64], index: 2, kind: input, shape index: {}]   ;;  %s444_s3 = inlined_call_operand.vmem [shape: f32[1,64], index: 3, kind: input, shape index: {}]   ;;  %s445_s4 = inlined_call_operand.vmem [shape: f32[1,64], index: 4, kind: input, shape index: {}]   ;;  %s446_s5 = inlined_call_operand.hbm [shape: f32[64,128], index: 5, kind: input, shape index: {}]   ;;  %s447_s6 = inlined_call_operand.vmem [shape: f32[1,128], index: 6, kind: input, shape index: {}]   ;;  %s448_s7 = inlined_call_operand.hbm [shape: f32[8,128], index: 7, kind: output, shape index: {}]  }
   0x1   :  { %13 = vsyncpa [#allocation6], 0  ;;  %s30_s26 = sshll.u32 %s442_s1, 4  ;;  %s31_s26 = int_to_ptr.hbm [resolvable:$true] %s30_s26 }
   0x2   :  { %14 = vsyncpa [#allocation4], 0  ;;  %s367_s27 = smov [#allocation5]   ;;  %s20_s8 = sshll.u32 %s441_s0, 4  ;;  %s21_s8 = int_to_ptr.hbm [resolvable:$true] %s20_s8 }
   0x3   :  { %s32_s28 = sshll.u32 %s367_s27, 4  ;;  %s368_s9 = smov 128   ;;  %s33_s28 = int_to_ptr.vmem [resolvable:$true] %s32_s28 }
   0x4   :  { %s369_s10 = smov 8   ;;  %s370_s11 = smov [#allocation2]  }
   0x5   :  { %38 = dma.hbm_to_vmem [thread:$0]  %s31_s26, 512, %s33_s28, [#allocation6], %s368_s9, %s368_s9, %s369_s10  }
   0x6   :  { %s22_s12 = sshll.u32 %s370_s11, 4  ;;  %s49_s15 = sshll.u32 %s446_s5, 4  ;;  %s23_s12 = int_to_ptr.vmem [resolvable:$true] %s22_s12  ;;  %s50_s15 = int_to_ptr.hbm [resolvable:$true] %s49_s15 }
   0x7   :  { %25 = dma.hbm_to_vmem [thread:$0]  %s21_s8, 128, %s23_s12, [#allocation3]  }
   0x8   :  { %s371_s1 = smov [#allocation7]  }
   0x9   :  { %s51_s16 = sshll.u32 %s371_s1, 4  ;;  %s52_s16 = int_to_ptr.vmem [resolvable:$true] %s51_s16 }
   0xa   :  { %57 = dma.hbm_to_vmem [thread:$0]  %s50_s15, 1024, %s52_s16, [#allocation6], %s368_s9, %s368_s9, %s369_s10  }
   0xb   :  { %361 = dma.done.wait [#allocation3], 128  }
   0xc   :  { %362 = vsyncadd [#allocation3], 4294967168 }
   0xd   :  { %363 = dma.done.wait [#allocation6], 1536  }
   0xe   :  { %364 = vsyncadd [#allocation6], 4294965760  ;;  %v76_v0 = vld [vmem:[#allocation5 + $0x18] sm:$0xff]  ;;  %v75_v1 = vld [vmem:[#allocation5 + $0x10] sm:$0xff]  ;;  %vm81_vm0 = vcmask 261120   ;;  %vm149_vm5 = vcmask 523264  }
   0xf   :  { %97 = vmatpush.msra.mxu0 %v76_v0  ;;  %v74_v2 = vld [vmem:[#allocation5 + $0x8] sm:$0xff]  ;;  %v73_v3 = vld [vmem:[#allocation5] sm:$0xff]  ;;  %v72_v4 = vld [vmem:[#allocation2] sm:$0xff]  ;;  %v372_v50 = vmov 64.0   ;;  %s373_s22 = smov [#allocation8]  }
  0x10   :  { %v255_v5 = vld [vmem:[%s443_s2] ss:$0 sm:$0xff]  ;;  %v197_v56 = vld [vmem:[#allocation7 + $0x30] sm:$0xff]  ;;  %v196_v57 = vld [vmem:[#allocation7 + $0x28] sm:$0xff]  ;;  %s232_s23 = sshll.u32 %s373_s22, 4  ;;  %s233_s23 = int_to_ptr.vmem [resolvable:$true] %s232_s23 }
  0x11   :  { %98 = vmatpush.msra.mxu0 %v75_v1  ;;  %v198_v54 = vld [vmem:[#allocation7 + $0x38] sm:$0xff]  ;;  %v195_v59 = vld [vmem:[#allocation7 + $0x20] sm:$0xff]  ;;  %v193_v62 = vld [vmem:[#allocation7 + $0x10] sm:$0xff] }
  0x12   :  { %214 = vmatpush.msra.mxu1 %v198_v54  ;;  %v194_v60 = vld [vmem:[#allocation7 + $0x18] sm:$0xff]  ;;  %v192_v0 = vld [vmem:[#allocation7 + $0x8] sm:$0xff]  ;;  %v191_v1 = vld [vmem:[#allocation7] sm:$0xff] }
  0x13   :  { %99 = vmatpush.msra.mxu0 %v74_v2 }
  0x14   :  { %215 = vmatpush.msra.mxu1 %v197_v56 }
  0x15   :  { %100 = vmatpush.msra.mxu0 %v73_v3 }
  0x16   :  { %245 = vmatmul.msk.f32.vlgmr.msra.gmra.mxu0 %vm81_vm0, %v72_v4  ;;  %216 = vmatpush.msra.mxu1 %v196_v57 }
  0x18   :  { %217 = vmatpush.msra.mxu1 %v195_v59 }
  0x1a   :  { %218 = vmatpush.msra.mxu1 %v194_v60 }
  0x1c   :  { %219 = vmatpush.msra.mxu1 %v193_v62 }
  0x1e   :  { %220 = vmatpush.msra.mxu1 %v192_v0 }
  0x20   :  { %221 = vmatpush.msra.mxu1 %v191_v1 }
  0x93   :  { %v102_v6 = vpop.f32.mrf.mxu0 }
  0x94   :  { %v103_v7 = vadd.f32 %v255_v5, %v102_v6 }
  0x96   :  { %v105_v8 = vmul.f32 0.70710677, %v103_v7 }
  0x98   :  { %v106_v9 = vmul.f32 %v105_v8, %v105_v8 }
  0x9a   :  { %v107_v10 = vmin.f32 %v106_v9, 16.0 }
  0x9c   :  { %v108_v11 = vmul.f32 2.1237322e-06, %v107_v10  ;;  %v119_v12 = vmul.f32 3.8918573e-05, %v107_v10 }
  0x9e   :  { %v109_v13 = vadd.f32 0.00028619796, %v108_v11  ;;  %v120_v14 = vadd.f32 0.001143296, %v119_v12 }
  0xa0   :  { %v110_v15 = vmul.f32 %v109_v13, %v107_v10  ;;  %v121_v16 = vmul.f32 %v120_v14, %v107_v10 }
  0xa2   :  { %v122_v17 = vadd.f32 0.014752088, %v121_v16  ;;  %v111_v18 = vadd.f32 0.0036580483, %v110_v15  ;;  %v256_v15 = vld [vmem:[%s444_s3] ss:$0 sm:$0xff] }
  0xa3   :  { %s234_s3 = sshll.u32 %s448_s7, 4  ;;  %s235_s3 = int_to_ptr.hbm [resolvable:$true] %s234_s3 }
  0xa4   :  { %v123_v19 = vmul.f32 %v122_v17, %v107_v10  ;;  %v112_v21 = vmul.f32 %v111_v18, %v107_v10  ;;  %v257_v18 = vld [vmem:[%s445_s4] ss:$0 sm:$0xff] }
  0xa6   :  { %v124_v20 = vadd.f32 0.112945676, %v123_v19  ;;  %v113_v24 = vadd.f32 0.05243302, %v112_v21  ;;  %v258_v21 = vld [vmem:[%s447_s6] ss:$0 sm:$0xff] }
  0xa8   :  { %v125_v22 = vmul.f32 %v124_v20, %v107_v10  ;;  %v114_v27 = vmul.f32 %v113_v24, %v107_v10 }
  0xaa   :  { %v126_v23 = vadd.f32 0.4994258, %v125_v22  ;;  %v115_v28 = vadd.f32 0.18741608, %v114_v27 }
  0xac   :  { %v127_v25 = vmul.f32 %v126_v23, %v107_v10  ;;  %v116_v30 = vmul.f32 %v115_v28, %v107_v10 }
  0xae   :  { %v128_v26 = vadd.f32 1.0, %v127_v25  ;;  %v117_v34 = vadd.f32 1.1283791, %v116_v30 }
  0xb0   :  { %259 = vrcp.f32 %v128_v26  ;;  %v140_v33 = vand.u32 2147483648, %v128_v26  ;;  %v138_v36 = vand.u32 2147483647, %v128_v26  ;;  %vm134_vm2 = vweird.f32 %v128_v26 }
  0xb1   :  { %v118_v39 = vmul.f32 %v117_v34, %v105_v8  ;;  %261 = vrcp.f32 %v372_v50 }
  0xb2   :  { %v141_v38 = vor.u32 1.1754944e-38, %v140_v33  ;;  %vm139_vm4 = vcmp.eq.f32.partialorder %v138_v36, 8.507059e+37 }
  0xb6   :  { %v260_v29 = vpop.eup %259 }
  0xb7   :  { %v130_v31 = vmul.f32 %v260_v29, %v128_v26  ;;  %vm135_vm1 = vweird.f32 %v260_v29  ;;  %v262_v51 = vpop.eup %261 }
  0xb8   :  { %vm136_vm3 = vmor %vm134_vm2, %vm135_vm1  ;;  %v154_v52 = vmul.f32 64.0, %v262_v51  ;;  %vm158_vm6 = vweird.f32 %v262_v51 }
  0xb9   :  { %v131_v32 = vsub.f32 1.0, %v130_v31 }
  0xba   :  { %v155_v53 = vsub.f32 1.0, %v154_v52 }
  0xbb   :  { %v132_v35 = vmul.f32 %v260_v29, %v131_v32 }
  0xbc   :  { %v156_v55 = vmul.f32 %v262_v51, %v155_v53 }
  0xbd   :  { %v133_v37 = vadd.f32 %v260_v29, %v132_v35 }
  0xbe   :  { %v157_v58 = vadd.f32 %v262_v51, %v156_v55 }
  0xbf   :  { %v137_v40 = vsel %vm136_vm3, %v260_v29, %v133_v37 }
  0xc0   :  { %v142_v41 = vsel %vm139_vm4, %v141_v38, %v137_v40  ;;  %v159_v63 = vsel %vm158_vm6, %v262_v51, %v157_v58 }
  0xc1   :  { %v143_v42 = vmul.f32 %v142_v41, %v118_v39 }
  0xc3   :  { %v246_v43 = vclamps-f32 %v143_v42, 1.0 }
  0xc5   :  { %v146_v44 = vmul.f32 0.5, %v246_v43 }
  0xc7   :  { %v147_v45 = vadd.f32 0.5, %v146_v44 }
  0xc9   :  { %v148_v46 = vmul.f32 %v147_v45, %v103_v7 }
  0xcb   :  { %v150_v47 = vsel %vm149_vm5, %v148_v46, 0.0  ;;  %v161_v48 = vmul.f32 %v148_v46, %v148_v46 }
  0xcc   :  { %151 = vadd.xlane.f32.xlu0 %v150_v47 }
  0xcd   :  { %v162_v49 = vsel %vm149_vm5, %v161_v48, 0.0 }
  0xd4   :  { %163 = vadd.xlane.f32.xlu0 %v162_v49 }
 0x13f   :  { %v152_v61 = vpop.xlane.xlu0 %151 }
 0x140   :  { %v160_v2 = vmul.f32 %v159_v63, %v152_v61 }
 0x142   :  { %v166_v4 = vmul.f32 %v160_v2, %v160_v2  ;;  %v168_v14 = vsub.f32 %v148_v46, %v160_v2 }
 0x147   :  { %v164_v3 = vpop.xlane.xlu0 %163 }
 0x148   :  { %v165_v5 = vmul.f32 %v164_v3, %v159_v63 }
 0x14a   :  { %v167_v6 = vsub.f32 %v165_v5, %v166_v4 }
 0x14c   :  { %v169_v7 = vadd.f32 1e-12, %v167_v6 }
 0x14e   :  { %263 = vrsqrt.f32 %v169_v7  ;;  %vm176_vm8 = vweird.f32 %v169_v7 }
 0x154   :  { %v264_v8 = vpop.eup %263 }
 0x155   :  { %v171_v9 = vmul.f32 %v264_v8, %v169_v7  ;;  %vm177_vm7 = vweird.f32 %v264_v8 }
 0x156   :  { %vm178_vm9 = vmor %vm176_vm8, %vm177_vm7 }
 0x157   :  { %v172_v10 = vmul.f32 %v264_v8, %v171_v9 }
 0x159   :  { %v173_v11 = vmul.f32 0.5, %v172_v10 }
 0x15b   :  { %v174_v12 = vsub.f32 1.5, %v173_v11 }
 0x15d   :  { %v175_v13 = vmul.f32 %v264_v8, %v174_v12 }
 0x15f   :  { %v179_v16 = vsel %vm178_vm9, %v264_v8, %v175_v13 }
 0x160   :  { %v180_v17 = vmul.f32 %v179_v16, %v168_v14 }
 0x162   :  { %v185_v19 = vmul.f32 %v256_v15, %v180_v17 }
 0x164   :  { %v190_v20 = vadd.f32 %v257_v18, %v185_v19 }
 0x166   :  { %247 = vmatmul.msk.f32.vlgmr.msra.gmra.mxu1 %vm149_vm5, %v190_v20 }
 0x1e3   :  { %v223_v22 = vpop.f32.mrf.mxu1 }
 0x1e4   :  { %v224_v23 = vadd.f32 %v258_v21, %v223_v22 }
 0x1e6   :  { %226 = vst [vmem:[#allocation8] sm:$0xff] %v224_v23 }
 0x1e7   :  { %237 = dma.vmem_to_hbm [thread:$0]  %s233_s23, 128, %s235_s3, [#allocation4]  }
 0x1e8   :  { %365 = dma.done.wait [#allocation4], 128  }
 0x1e9   :  { %366 = vsyncadd [#allocation4], 4294967168 }
 0x1ea   :  { %242 = vsyncpa [#allocation3], 1 }
 0x1eb   :  { %243 = vsyncpa [#allocation6], 1 }
 0x1ec   :  { %244 = vsyncpa [#allocation4], 1 }

</bundles_post_ra>
